<compile_context>
chip_gen: v5e
topology: v5e:2x2
jax: 0.10.0
libtpu: 0.0.40
codegen_flags: <defaults>
</compile_context>

<pallas_src>
import jax
import jax.numpy as jnp
from jax.experimental import pallas as pl
from jax.experimental.pallas import tpu as pltpu


def _round_up(n, m):
    return (n + m - 1) // m * m


_VMEM_LIMIT_BYTES = 32 * 1024 * 1024   # explicit scoped-VMEM limit (safe on v5e/v6e/v7x)
_VMEM_BUDGET_BYTES = 28 * 1024 * 1024  # tile-sizing budget (keeps double-buffering alive)


# ----------------------------------------------------------------------------
# Pallas kernel: one CKN layer applied to a tile of patches.
#
#   raw = p @ (W / sigma^2)                         (MXU, bf16 in / f32 acc)
#   rsq = rsqrt(||p||^2)                            (EUP, f32)
#   act = ||p|| * exp(raw * rsq)                    (VALU/EUP, f32)
#   out = act @ [kappa(W^T W)^(-1/2) * e^(-1/s^2)]  (MXU, bf16 in / f32 acc)
# ----------------------------------------------------------------------------
def ckn_layer_kernel(patches_ref, w_ref, lin_ref, out_ref):
    p_lo = patches_ref[...]                                     # (TN, D) bf16
    p = p_lo.astype(jnp.float32)

    # Filter projection first (normalization commutes with the linear map, so
    # it is applied to the (TN, Fp) result instead of the (TN, D) patches).
    raw = jnp.dot(p_lo, w_ref[...], preferred_element_type=jnp.float32)  # (TN, Fp)

    # Per-patch squared L2 norm (lane reduction, f32), rsqrt on the EUP.
    sq = jnp.sum(p * p, axis=-1, keepdims=True)                 # (TN, 1)
    rsq = jax.lax.rsqrt(jnp.maximum(sq, 1e-12))
    norm = sq * rsq                                             # == ||p|| (0 for zero rows)

    # RBF kernel map on the sphere, re-scaled by the patch norm.  1/sigma^2 is
    # folded into W; the constant exp(-1/sigma^2) is folded into lintrans.
    act = norm * jnp.exp(raw * rsq)                             # (TN, Fp) f32

    # Kernel correction kappa(W^T W)^(-1/2) (MXU).  Padded rows/cols of lin
    # are zero, so padded act columns contribute nothing and padded output
    # columns are zero.
    out = jnp.dot(act.astype(jnp.bfloat16), lin_ref[...],
                  preferred_element_type=jnp.float32)
    out_ref[...] = out.astype(out_ref.dtype)


def _choose_tile_n(n, d, f_pad, out_bytes):
    """Row-tile size: (a) double-buffered in/out + resident W/lin fit in the
    ~28 MiB budget (valid on v7x's 64 MiB physical VMEM), (b) <= 2048 rows,
    (c) >= 2 grid steps whenever n > 16 so v7x's second TensorCore has work."""
    const_bytes = 2 * (d * f_pad + f_pad * f_pad) * 2           # bf16 W + lin, 2 bufs
    per_row = 2 * (d * 2 + f_pad * out_bytes)                   # 2 bufs of in + out rows
    cap = max((_VMEM_BUDGET_BYTES - const_bytes) // per_row, 16)
    cap = max((cap // 16) * 16, 16)
    half = _round_up(max(-(-n // 2), 16), 16)                   # ceil(n/2), >=2 steps
    tile_n = max(min(2048, cap, half), 16)
    n_pad = _round_up(n, tile_n)
    return tile_n, n_pad


def ckn_layer_pallas(patches, w_pad, lin_pad, *, tile_n, out_dtype):
    """patches: (N_pad, D) bf16, w_pad: (D, Fp) bf16, lin_pad: (Fp, Fp) bf16
    -> (N_pad, Fp) out_dtype."""
    n_pad, d = patches.shape
    f_pad = w_pad.shape[1]
    assert n_pad % tile_n == 0
    assert f_pad % 128 == 0

    # W / lintrans use a constant index_map (resident across grid steps); once
    # F is large their double buffer is VMEM better spent on more rows, so
    # single-buffer them.  (Not triggered at the demo sizes.)
    const_mode = dict(pipeline_mode=pl.Buffered(1)) if f_pad >= 512 else {}
    w_spec = pl.BlockSpec((d, f_pad), lambda i: (0, 0), **const_mode)
    lin_spec = pl.BlockSpec((f_pad, f_pad), lambda i: (0, 0), **const_mode)

    out_itemsize = jnp.dtype(out_dtype).itemsize
    cost = pl.CostEstimate(
        flops=2 * n_pad * (d + f_pad) * f_pad,
        transcendentals=n_pad * (f_pad + 1),
        bytes_accessed=(n_pad * d * 2 + d * f_pad * 2 + f_pad * f_pad * 2
                        + n_pad * f_pad * out_itemsize),
    )

    return pl.pallas_call(
        ckn_layer_kernel,
        out_shape=jax.ShapeDtypeStruct((n_pad, f_pad), out_dtype),
        grid_spec=pltpu.PrefetchScalarGridSpec(
            num_scalar_prefetch=0,
            grid=(n_pad // tile_n,),
            in_specs=[
                pl.BlockSpec((tile_n, d), lambda i: (i, 0)),
                w_spec,
                lin_spec,
            ],
            out_specs=pl.BlockSpec((tile_n, f_pad), lambda i: (i, 0)),
        ),
        compiler_params=pltpu.CompilerParams(
            # Each row tile writes a distinct output block (no carried
            # accumulator) -> embarrassingly parallel; lets v7x use both TCs.
            dimension_semantics=("parallel",),
            vmem_limit_bytes=_VMEM_LIMIT_BYTES),
        cost_estimate=cost,
    )(patches, w_pad, lin_pad)


# ----------------------------------------------------------------------------
# Plain-JAX glue: channels-last patch extraction, pooling, parameter build.
# ----------------------------------------------------------------------------
def im2col_nhwc(x, ph, pw, stride):
    """x: (B, H, W, C) -> patches (B, oH, oW, ph*pw*C).

    Patch-feature ordering is (i, j, c) rather than torch.unfold's (c, i, j);
    since the filters W are the learned parameters, this fixed permutation of
    the patch axis is absorbed by the same permutation of W's rows.
    """
    b, h, w, c = x.shape
    oh = (h - ph) // stride + 1
    ow = (w - pw) // stride + 1
    cols = []
    for i in range(ph):
        for j in range(pw):
            cols.append(x[:, i:i + stride * oh:stride, j:j + stride * ow:stride, :])
    patches = jnp.concatenate(cols, axis=-1)                    # (B, oH, oW, ph*pw*C)
    return patches, oh, ow


def avg_pool2_nhwc(x):
    """2x2 average pooling, stride 2, on (B, H, W, F); odd trailing row/col dropped."""
    # TODO(synk): true CKN uses a Gaussian pooling filter with subsampling;
    # 2x2 average pooling with subsampling 2 is used here as the pooling step.
    dt = x.dtype
    b, h, w, f = x.shape
    h2, w2 = (h // 2) * 2, (w // 2) * 2
    x = x[:, :h2, :w2, :].astype(jnp.float32)
    x = x.reshape(b, h2 // 2, 2, w2 // 2, 2, f).mean(axis=(2, 4))
    return x.astype(dt)


def inv_sqrt_psd(k, eps=1e-5):
    w, v = jnp.linalg.eigh(k)
    w = jnp.maximum(w, eps)
    return (v * (1.0 / jnp.sqrt(w))) @ v.T


def make_layer_params(key, in_dim, n_filters, sigma, *, patch_size, stride, pool):
    """Unit-norm filter columns + kernel-correction matrix kappa(W^T W)^(-1/2),
    padded to a lane-dense filter dimension and pre-cast to bf16 for the MXU."""
    w = jax.random.normal(key, (in_dim, n_filters), dtype=jnp.float32)
    w = w / jnp.linalg.norm(w, axis=0, keepdims=True)
    inv_sigma_sq = 1.0 / (sigma * sigma)
    gram = w.T @ w
    kappa_gram = jnp.exp((gram - 1.0) * inv_sigma_sq)
    lintrans = inv_sqrt_psd(kappa_gram)
    # Fold the constant exp(-1/sigma^2) of the kernel map into lintrans so the
    # kernel computes exp(s/sigma^2) instead of exp((s-1)/sigma^2).
    lintrans = lintrans * jnp.exp(jnp.float32(-inv_sigma_sq))
    # Fold 1/sigma^2 into W so the kernel skips the (TN, Fp) scale multiply.
    w_scaled = w * jnp.float32(inv_sigma_sq)

    # 128-wide padding fits v5e's MXU; wide layers get 256 for v6e/v7x's
    # 256-wide MXU.  Padding is zero columns of W / zero rows+cols of
    # lintrans, sliced off in the wrapper, so numerics are unchanged.
    pad_to = 256 if n_filters >= 192 else 128
    f_pad = _round_up(n_filters, pad_to)
    w_pad = jnp.pad(w_scaled, ((0, 0), (0, f_pad - n_filters))).astype(jnp.bfloat16)
    lin_pad = jnp.pad(lintrans, ((0, f_pad - n_filters),
                                 (0, f_pad - n_filters))).astype(jnp.bfloat16)
    return dict(w_pad=w_pad, lin_pad=lin_pad, n_filters=n_filters,
                patch_size=patch_size, stride=stride, pool=pool)


def ckn_layer_forward(x_nhwc, p, *, out_dtype):
    """x_nhwc: (B, H, W, C) -> (B, H', W', F) in out_dtype."""
    b = x_nhwc.shape[0]
    patches, oh, ow = im2col_nhwc(x_nhwc, p["patch_size"], p["patch_size"],
                                  p["stride"])
    d = patches.shape[-1]
    n = b * oh * ow
    patches = patches.reshape(n, d)

    f_pad = p["w_pad"].shape[1]
    tile_n, n_pad = _choose_tile_n(n, d, f_pad, jnp.dtype(out_dtype).itemsize)
    # Zero row padding is harmless: zero norm -> zero kernel-map output.
    if n_pad != n:
        patches = jnp.pad(patches, ((0, n_pad - n), (0, 0)))

    out = ckn_layer_pallas(patches, p["w_pad"], p["lin_pad"],
                           tile_n=tile_n, out_dtype=out_dtype)
    out = out[:n, :p["n_filters"]].reshape(b, oh, ow, p["n_filters"])
    if p["pool"]:
        # TODO(synk): fuse the 2x2 pool into the kernel epilogue (tile over
        # output rows) to cut the pre-pool activation writeback 4x.
        out = avg_pool2_nhwc(out)
    return out


def ckn_forward(x_nchw, params):
    """Sequential CKN forward (featurize=None).  NCHW in / NCHW out, NHWC +
    bf16 activations inside; the final layer is emitted in f32."""
    x = jnp.transpose(x_nchw, (0, 2, 3, 1)).astype(jnp.bfloat16)   # NHWC once, bf16
    for li, p in enumerate(params):
        last = li == len(params) - 1
        x = ckn_layer_forward(x, p,
                              out_dtype=jnp.float32 if last else jnp.bfloat16)
    return jnp.transpose(x, (0, 3, 1, 2)).astype(jnp.float32)      # NCHW once


# ----------------------------------------------------------------------------
if __name__ == "__main__":
    key = jax.random.PRNGKey(0)
    kx, k0, k1 = jax.random.split(key, 3)

    # small input consistent with an NCHW conv net: (batch=2, channels=4, 16x16)
    x = jax.random.normal(kx, (2, 4, 16, 16), dtype=jnp.float32)

    # two CKN layers
    # layer 0: 3x3 patches, 32 filters   -> 16x16 -> 14x14 -> pool -> 7x7
    # layer 1: 2x2 patches, 64 filters   ->  7x7  ->  6x6  -> pool -> 3x3
    sigma = 0.6
    params = [
        make_layer_params(k0, in_dim=4 * 3 * 3, n_filters=32, sigma=sigma,
                          patch_size=3, stride=1, pool=True),
        make_layer_params(k1, in_dim=32 * 2 * 2, n_filters=64, sigma=sigma,
                          patch_size=2, stride=1, pool=True),
    ]

    out = ckn_forward(x, params)
    out = jax.block_until_ready(out)

    assert out.shape == (2, 64, 3, 3), out.shape
    assert jnp.all(jnp.isfinite(out))
    print("KERNEL_OK")
</pallas_src>

<mosaic_0001>
module attributes {stable_mosaic.version = 11 : i64} {
  func.func @ckn_layer_kernel(%arg0: i32, %arg1: memref<208x36xbf16, #tpu.memory_space<vmem>>, %arg2: memref<36x128xbf16, #tpu.memory_space<vmem>>, %arg3: memref<128x128xbf16, #tpu.memory_space<vmem>>, %arg4: memref<208x128xbf16, #tpu.memory_space<vmem>>) attributes {dimension_semantics = [#tpu.dimension_semantics<parallel>], iteration_bounds = array<i64: 2>, scalar_prefetch = 0 : i64, scratch_operands = 0 : i64, tpu.core_type = #tpu.core_type<tc>, window_params = [{transform_indices = @transform_0, window_bounds = array<i64: 208, 36>}, {pipeline_mode = #tpu.pipeline_mode<synchronous>, transform_indices = @transform_1, window_bounds = array<i64: 36, 128>}, {pipeline_mode = #tpu.pipeline_mode<synchronous>, transform_indices = @transform_2, window_bounds = array<i64: 128, 128>}, {transform_indices = @transform_3, window_bounds = array<i64: 208, 128>}]} {
    %c0 = arith.constant 0 : index
    %c0_0 = arith.constant 0 : index
    %0 = vector.load %arg1[%c0, %c0_0] : memref<208x36xbf16, #tpu.memory_space<vmem>>, vector<208x36xbf16>
    %1 = arith.extf %0 : vector<208x36xbf16> to vector<208x36xf32>
    %c0_1 = arith.constant 0 : index
    %c0_2 = arith.constant 0 : index
    %2 = vector.load %arg2[%c0_1, %c0_2] : memref<36x128xbf16, #tpu.memory_space<vmem>>, vector<36x128xbf16>
    %cst = arith.constant dense<0.000000e+00> : vector<208x128xf32>
    %3 = tpu.matmul %0, %2, %cst {dimension_numbers = #tpu.dot_dimension_numbers<[1], [0], [0], [1], [0, 0, 1, 1], [], []>} : vector<208x36xbf16>, vector<36x128xbf16>, vector<208x128xf32> -> vector<208x128xf32>
    %4 = arith.mulf %1, %1 : vector<208x36xf32>
    %cst_3 = arith.constant dense<0.000000e+00> : vector<208xf32>
    %5 = vector.multi_reduction <add>, %4, %cst_3 [1] : vector<208x36xf32> to vector<208xf32>
    %6 = vector.shape_cast %5 : vector<208xf32> to vector<208x1xf32>
    %cst_4 = arith.constant 9.99999996E-13 : f32
    %7 = vector.broadcast %cst_4 : f32 to vector<208x1xf32>
    %8 = arith.maximumf %6, %7 : vector<208x1xf32>
    %9 = math.rsqrt %8 : vector<208x1xf32>
    %10 = arith.mulf %6, %9 : vector<208x1xf32>
    %11 = vector.broadcast %9 : vector<208x1xf32> to vector<208x128xf32>
    %12 = arith.mulf %3, %11 : vector<208x128xf32>
    %13 = math.exp %12 : vector<208x128xf32>
    %14 = vector.broadcast %10 : vector<208x1xf32> to vector<208x128xf32>
    %15 = arith.mulf %14, %13 : vector<208x128xf32>
    %16 = arith.truncf %15 : vector<208x128xf32> to vector<208x128xbf16>
    %c0_5 = arith.constant 0 : index
    %c0_6 = arith.constant 0 : index
    %17 = vector.load %arg3[%c0_5, %c0_6] : memref<128x128xbf16, #tpu.memory_space<vmem>>, vector<128x128xbf16>
    %cst_7 = arith.constant dense<0.000000e+00> : vector<208x128xf32>
    %18 = tpu.matmul %16, %17, %cst_7 {dimension_numbers = #tpu.dot_dimension_numbers<[1], [0], [0], [1], [0, 0, 1, 1], [], []>} : vector<208x128xbf16>, vector<128x128xbf16>, vector<208x128xf32> -> vector<208x128xf32>
    %19 = arith.truncf %18 : vector<208x128xf32> to vector<208x128xbf16>
    %c0_8 = arith.constant 0 : index
    %c0_9 = arith.constant 0 : index
    %20 = vector.load %arg4[%c0_8, %c0_9] : memref<208x128xbf16, #tpu.memory_space<vmem>>, vector<208x128xbf16>
    tpu.vector_store %arg4[%c0_8, %c0_9], %19 {strides = array<i32>} : memref<208x128xbf16, #tpu.memory_space<vmem>>, vector<208x128xbf16>,
    return
  }
  func.func @transform_0(%arg0: i32) -> (i32, i32) {
    %c0_i32 = arith.constant 0 : i32
    %c0_i32_0 = arith.constant 0 : i32
    return %arg0, %c0_i32 : i32, i32
  }
  func.func @transform_1(%arg0: i32) -> (i32, i32) {
    %c0_i32 = arith.constant 0 : i32
    %c0_i32_0 = arith.constant 0 : i32
    %c0_i32_1 = arith.constant 0 : i32
    return %c0_i32, %c0_i32_0 : i32, i32
  }
  func.func @transform_2(%arg0: i32) -> (i32, i32) {
    %c0_i32 = arith.constant 0 : i32
    %c0_i32_0 = arith.constant 0 : i32
    %c0_i32_1 = arith.constant 0 : i32
    return %c0_i32, %c0_i32_0 : i32, i32
  }
  func.func @transform_3(%arg0: i32) -> (i32, i32) {
    %c0_i32 = arith.constant 0 : i32
    %c0_i32_0 = arith.constant 0 : i32
    return %arg0, %c0_i32 : i32, i32
  }
}

</mosaic_0001>

<bundles_post_ra>
// kernel: tpu_custom_call.1
= control target key start
LH: loop header
LB: loop body
LE: loop exit
PB: predicated region body
PF: predicated region fallthrough
CT: control target
= control target key end

     0   :  { %8 = vsyncpa [#allocation3], 0  ;;  %s2453_s0 = inlined_call_operand.vmem [shape: bf16[416,36], index: 0, kind: input, shape index: {}]   ;;  %s2454_s1 = inlined_call_operand.vmem [shape: bf16[36,128], index: 1, kind: input, shape index: {}]   ;;  %s2455_s2 = inlined_call_operand.vmem [shape: bf16[128,128], index: 2, kind: input, shape index: {}]   ;;  %s2456_s3 = inlined_call_operand.hbm [shape: bf16[416,128], index: 3, kind: output, shape index: {}]  }
   0x1   :  { %10 = vsyncpa [#allocation3 + $0x1], 0  ;;  %s1694_s12 = smov 0   ;;  %s1696_s13 = smov 0  }
   0x2   :  { %s1698_s14 = smov 0   ;;  %s1700_s15 = smov 0  }
   0x3 LB: > { %s1715_s16 = sadd.s32 4294967295, %s1670_s15   ;;  %s1229_s17 = sadd.s32 4294967294, %s1670_s15   ;;  %s1670_s15 = sphi %s1700_s15, %s2476_s15   ;;  %s1666_s14 = sphi %s1698_s14, %s2475_s14   ;;  %s1662_s13 = sphi %s1696_s13, %s2474_s13   ;;  %s1658_s12 = sphi %s1694_s12, %s2473_s12  }
   0x4   : > { %s1719_s18 = sadd.s32 1, %s1670_s15   ;;  %s91_s19 = sadd.s32 1, %s1666_s14 }
   0x5   : > { %s88_s20 = ssub.s32 %s1670_s15, %s1719_s18  ;;  %p101_p0 = scmp.ne.s32.totalorder %s1666_s14, %s1662_s13 }
   0x6   : > { %p89_p1 = scmp.eq.s32.totalorder %s88_s20, 0  ;;  %p102_p2 = scmp.eq.s32.totalorder %s1715_s16, 1 }
   0x7   : > { %p107_p3 = scmp.ne.s32.totalorder %s1662_s13, %s1658_s12  ;;  %p108_p4 = scmp.eq.s32.totalorder %s1229_s17, 1 }
   0x8   : > { %s1730_s21 = scalar_select %p89_p1, %s1666_s14, %s91_s19  }
   0x9   : > { %p1732_p5 = por %p102_p2, %p101_p0  ;;  %p1736_p6 = por %p108_p4, %p107_p3 }
   0xa   : > { %p1232_p7 = scmp.ge.s32.totalorder %s1670_s15, 1  ;;  %p141_p8 = scmp.lt.s32.totalorder %s1670_s15, 3 }
   0xc   : > { %p142_p9 = pnand %p1232_p7, %p141_p8 }
   0xd   : > { %s165_s26 = smul.u32 (!%p142_p9), 26, %s1715_s16  ;;  %s162_s6 = sand.u32 (!%p142_p9), 1, %s1662_s13  }
   0xe   : > { %145 = sbr.rel (%p142_p9) target bundleno = 507 (0x1fb), region = 32  ;;  %s1152_s24 = scalar_lea.sflag (!%p142_p9), [#allocation3], %s162_s6 }
   0xf   : > { %p166_p10 = scmp.lt.s32.totalorder (!%p142_p9), %s165_s26, 51  ;;  %s1462_s7 = smul.u32 (!%p142_p9), 104, %s162_s6 }
  0x10   : > { %s1365_s9 = smul.u32 (!%p142_p9), 104, %s1715_s16  ;;  %s1628_s28 = scalar_lea.hbm (!%p142_p9), %s2456_s3, 208 }
  0x11   : > { %s2401_s8 = scalar_lea.vmem (!%p142_p9), [#allocation2], %s1462_s7 }
  0x12   : > { %s1163_s17 = scalar_lea.hbm (!%p142_p9), %s2456_s3, %s1365_s9  ;;  %s1164_s19 = sshll.u32 (!%p142_p9), %s2401_s8, 4  ;;  %s1165_s19 = int_to_ptr.vmem [resolvable:$true] %s1164_s19 }
  0x13   : > { %v229_v0 = vld [vmem:[%s2454_s1 + $0x10] sm:$0x3]  ;;  %vm350_vm0 = vcmask 1041408   ;;  %s2478_s26 = smov (!%p166_p10, %s165_s26), 51  ;;  %v1356_v4 = vld [vmem:[%s2454_s1 + $0x8] sm:$0xff]  ;;  %v1355_v10 = vld [vmem:[%s2454_s1] sm:$0xff] }
  0x14   : > { %v304_v1 = vunpack.c.l.b16 %v229_v0  ;;  %s1233_s29 = sshll.u32 %s2478_s26, 2  ;;  %vm310_vm1 = vcmask 293888   ;;  %s1166_s20 = sshll.u32 %s1163_s17, 4  ;;  %s1167_s20 = int_to_ptr.hbm [resolvable:$true] %s1166_s20 }
  0x15   : > { %s1752_s5 = scalar_lea.vmem %s2453_s0, %s1233_s29  ;;  %s1622_s25 = sshra.s32 %s1167_s20, 4  ;;  %s1623_s25 = int_to_ptr.hbm [resolvable:$true] %s1622_s25 }
  0x16   : > { %v307_v2 = vpack.c.b16 %v304_v1, %v304_v1  ;;  %v185_v5 = vld [vmem:[%s1752_s5 + $0x30] sm:$0xff]   ;;  %v173_v6 = vld [vmem:[%s1752_s5] sm:$0xff]   ;;  %v187_v9 = vld [vmem:[%s1752_s5 + $0x38] sm:$0xff]   ;;  %s1624_s26 = scalar_lea.hbm %s1623_s25, 104  ;;  %p1629_p0 = scmp.lt.s32.totalorder %s1623_s25, %s2456_s3 }
  0x17   : > { %v211_v7 = vunpack.c.l.bf16 %v185_v5  ;;  %v199_v8 = vunpack.c.l.bf16 %v173_v6  ;;  %v213_v11 = vunpack.c.l.bf16 %v187_v9  ;;  %v212_v14 = vunpack.c.h.bf16 %v185_v5  ;;  %v1342_v20 = vld [vmem:[%s1752_s5] sm:$0xff]  ;;  %v175_v24 = vld [vmem:[%s1752_s5 + $0x8] sm:$0xff]   ;;  %v177_v36 = vld [vmem:[%s1752_s5 + $0x10] sm:$0xff]   ;;  %p1625_p11 = scmp.ne.s32.totalorder %s1623_s25, %s1624_s26  ;;  %p1630_p1 = scmp.lt.s32.totalorder %s1628_s28, %s1624_s26 }
  0x18   : > { %v352_v3 = vsel %vm350_vm0, %v307_v2, 0  ;;  %v200_v15 = vunpack.c.h.bf16 %v173_v6  ;;  %v214_v17 = vunpack.c.h.bf16 %v187_v9  ;;  %v189_v26 = vld [vmem:[%s1752_s5 + $0x40] sm:$0xff]   ;;  %v201_v28 = vunpack.c.l.bf16 %v175_v24  ;;  %v1343_v43 = vld [vmem:[%s1752_s5 + $0x8] sm:$0xff]  ;;  %v179_v48 = vld [vmem:[%s1752_s5 + $0x18] sm:$0xff]  }
  0x19   : > { %359 = vmatpush.bf16.msra.mxu0 %v352_v3  ;;  %1443 = vmatpush.bf16.msra.mxu3 %v352_v3  ;;  %v440_v12 = vmul.f32 %v211_v7, %v211_v7  ;;  %v428_v13 = vmul.f32 %v199_v8, %v199_v8  ;;  %v442_v16 = vmul.f32 %v213_v11, %v213_v11  ;;  %v202_v31 = vunpack.c.h.bf16 %v175_v24  ;;  %v191_v47 = vld [vmem:[%s1752_s5 + $0x48] sm:$0xff]   ;;  %v193_v58 = vld [vmem:[%s1752_s5 + $0x50] sm:$0xff]   ;;  %v181_v2 = vld [vmem:[%s1752_s5 + $0x20] sm:$0xff]   ;;  %p1626_p12 = pnand %p1625_p11, %p1732_p5  ;;  %p1631_p2 = por %p1630_p1, %p1629_p0 }
  0x1a   : > { %v441_v22 = vmul.f32 %v212_v14, %v212_v14  ;;  %v429_v23 = vmul.f32 %v200_v15, %v200_v15  ;;  %v443_v25 = vmul.f32 %v214_v17, %v214_v17  ;;  %v215_v32 = vunpack.c.l.bf16 %v189_v26  ;;  %v1344_v0 = vld [vmem:[%s1752_s5 + $0x10] sm:$0xff] }
  0x1b   : > { %v490_v18 = vsel %vm310_vm1, %v440_v12, 0.0  ;;  %v454_v19 = vsel %vm310_vm1, %v428_v13, 0.0  ;;  %v496_v21 = vsel %vm310_vm1, %v442_v16, 0.0  ;;  %v430_v33 = vmul.f32 %v201_v28, %v201_v28  ;;  %v1345_v16 = vld [vmem:[%s1752_s5 + $0x18] sm:$0xff]  ;;  %p1627_p13 = pneg %p1626_p12 }
  0x1c   : > { %491 = vadd.xlane.f32.xlu0 %v490_v18  ;;  %455 = vadd.xlane.f32.xlu1 %v454_v19  ;;  %v493_v27 = vsel %vm310_vm1, %v441_v22, 0.0  ;;  %v457_v29 = vsel %vm310_vm1, %v429_v23, 0.0  ;;  %v499_v30 = vsel %vm310_vm1, %v443_v25, 0.0  ;;  %v431_v34 = vmul.f32 %v202_v31, %v202_v31  ;;  %v183_v18 = vld [vmem:[%s1752_s5 + $0x28] sm:$0xff]  }
  0x1d   : > { %360 = vmatpush.bf16.msra.mxu0 %v1356_v4  ;;  %1444 = vmatpush.bf16.msra.mxu3 %v1356_v4  ;;  %v444_v35 = vmul.f32 %v215_v32, %v215_v32  ;;  %v460_v37 = vsel %vm310_vm1, %v430_v33, 0.0  ;;  %v216_v38 = vunpack.c.h.bf16 %v189_v26  ;;  %v203_v41 = vunpack.c.l.bf16 %v177_v36  ;;  %v1350_v4 = vld [vmem:[%s1752_s5 + $0x40] sm:$0xff]  ;;  %v1347_v31 = vld [vmem:[%s1752_s5 + $0x28] sm:$0xff]  ;;  %v1353_v32 = vld [vmem:[%s1752_s5 + $0x58] sm:$0xff]  ;;  %p1632_p3 = pnand %p1631_p2, %p1627_p13 }
  0x1e   : > { %497 = vadd.xlane.f32.xlu2 %v496_v21  ;;  %v463_v39 = vsel %vm310_vm1, %v431_v34, 0.0  ;;  %v204_v42 = vunpack.c.h.bf16 %v177_v36  ;;  %v217_v50 = vunpack.c.l.bf16 %v191_v47  ;;  %v205_v53 = vunpack.c.l.bf16 %v179_v48  ;;  %v195_v36 = vld [vmem:[%s1752_s5 + $0x58] sm:$0xf] }
  0x1f   : > { %v502_v40 = vsel %vm310_vm1, %v444_v35, 0.0  ;;  %v445_v44 = vmul.f32 %v216_v38, %v216_v38  ;;  %v432_v45 = vmul.f32 %v203_v41, %v203_v41  ;;  %v218_v54 = vunpack.c.h.bf16 %v191_v47  ;;  %v1348_v38 = vld [vmem:[%s1752_s5 + $0x30] sm:$0xff] }
  0x20   : > { %v433_v46 = vmul.f32 %v204_v42, %v204_v42  ;;  %v446_v55 = vmul.f32 %v217_v50, %v217_v50  ;;  %v434_v56 = vmul.f32 %v205_v53, %v205_v53  ;;  %v206_v60 = vunpack.c.h.bf16 %v179_v48  ;;  %v1363_v42 = vld [vmem:[%s2455_s2 + $0x30] sm:$0xff]  ;;  %v1349_v50 = vld [vmem:[%s1752_s5 + $0x38] sm:$0xff] }
  0x21   : > { %361 = vmatpush.bf16.msra.mxu0 %v1355_v10  ;;  %1445 = vmatpush.bf16.msra.mxu3 %v1355_v10  ;;  %v505_v49 = vsel %vm310_vm1, %v445_v44, 0.0  ;;  %v466_v51 = vsel %vm310_vm1, %v432_v45, 0.0  ;;  %v447_v57 = vmul.f32 %v218_v54, %v218_v54  ;;  %v219_v63 = vunpack.c.l.bf16 %v193_v58  ;;  %v196_v10 = vld [vmem:[%s1752_s5 + $0x5c] sm:$0xff]   ;;  %v198_v44 = vld [vmem:[%s1752_s5 + $0x64] sm:$0xf]  ;;  %v1359_v53 = vld [vmem:[%s2455_s2 + $0x10] sm:$0xff] }
  0x22   : > { %v469_v52 = vsel %vm310_vm1, %v433_v46, 0.0  ;;  %v508_v59 = vsel %vm310_vm1, %v446_v55, 0.0  ;;  %v472_v61 = vsel %vm310_vm1, %v434_v56, 0.0  ;;  %v435_v1 = vmul.f32 %v206_v60, %v206_v60  ;;  %v1362_v46 = vld [vmem:[%s2455_s2 + $0x28] sm:$0xff] }
  0x23   : > { %v511_v62 = vsel %vm310_vm1, %v447_v57, 0.0  ;;  %v448_v3 = vmul.f32 %v219_v63, %v219_v63  ;;  %v207_v6 = vunpack.c.l.bf16 %v181_v2  ;;  %v208_v8 = vunpack.c.h.bf16 %v181_v2  ;;  %v1358_v57 = vld [vmem:[%s2455_s2 + $0x8] sm:$0xff] }
  0x24   : > { %1294 = vmatmul.msk.bf16.vlgmr.msra.gmra.mxu0 %vm310_vm1, %v1342_v20  ;;  %494 = vadd.xlane.f32.xlu0 %v493_v27  ;;  %v475_v5 = vsel %vm310_vm1, %v435_v1, 0.0  ;;  %v222_v13 = vunpack.c.l.bf16 %v196_v10  ;;  %v223_v15 = vunpack.c.h.bf16 %v196_v10  ;;  %v1351_v20 = vld [vmem:[%s1752_s5 + $0x48] sm:$0xff]  ;;  %v209_v22 = vunpack.c.l.bf16 %v183_v18 }
  0x25   : > { %458 = vadd.xlane.f32.xlu1 %v457_v29  ;;  %1302 = vmatmul.msk.bf16.vlgmr.msra.gmra.mxu3 %vm310_vm1, %v1350_v4  ;;  %v514_v7 = vsel %vm310_vm1, %v448_v3, 0.0  ;;  %v436_v9 = vmul.f32 %v207_v6, %v207_v6  ;;  %v437_v11 = vmul.f32 %v208_v8, %v208_v8  ;;  %v210_v24 = vunpack.c.h.bf16 %v183_v18  ;;  %v1346_v29 = vld [vmem:[%s1752_s5 + $0x20] sm:$0xff] }
  0x26   : > { %500 = vadd.xlane.f32.xlu2 %v499_v30  ;;  %v451_v17 = vmul.f32 %v222_v13, %v222_v13  ;;  %v452_v19 = vmul.f32 %v223_v15, %v223_v15  ;;  %v438_v25 = vmul.f32 %v209_v22, %v209_v22  ;;  %v1352_v30 = vld [vmem:[%s1752_s5 + $0x50] sm:$0xff]  ;;  %v220_v33 = vunpack.c.h.bf16 %v193_v58 }
  0x27   : > { %v478_v12 = vsel %vm310_vm1, %v436_v9, 0.0  ;;  %v481_v14 = vsel %vm310_vm1, %v437_v11, 0.0  ;;  %v439_v26 = vmul.f32 %v210_v24, %v210_v24  ;;  %v224_v45 = vunpack.c.l.bf16 %v198_v44 }
  0x28   : > { %v523_v21 = vsel %vm310_vm1, %v451_v17, 0.0  ;;  %v526_v23 = vsel %vm310_vm1, %v452_v19, 0.0  ;;  %v484_v27 = vsel %vm310_vm1, %v438_v25, 0.0  ;;  %v449_v34 = vmul.f32 %v220_v33, %v220_v33 }
  0x29   : > { %v487_v28 = vsel %vm310_vm1, %v439_v26, 0.0  ;;  %v453_v47 = vmul.f32 %v224_v45, %v224_v45 }
  0x2a   : > { %v517_v35 = vsel %vm310_vm1, %v449_v34, 0.0 }
  0x2b   : > { %v529_v48 = vsel %vm310_vm1, %v453_v47, 0.0 }
  0x2c   : > { %461 = vadd.xlane.f32.xlu0 %v460_v37  ;;  %v221_v37 = vunpack.c.l.bf16 %v195_v36 }
  0x2d   : > { %464 = vadd.xlane.f32.xlu1 %v463_v39  ;;  %v1364_v39 = vld [vmem:[%s2455_s2 + $0x38] sm:$0xff] }
  0x2e   : > { %503 = vadd.xlane.f32.xlu2 %v502_v40  ;;  %v450_v40 = vmul.f32 %v221_v37, %v221_v37  ;;  %1025 = vmatpush.bf16.msra.mxu1 %v1364_v39 }
  0x2f   : > { %1446 = vmatpush.bf16.msra.mxu2 %v1364_v39  ;;  %1447 = vmatpush.bf16.msrb.mxu3 %v1364_v39 }
  0x30   : > { %v520_v41 = vsel %vm310_vm1, %v450_v40, 0.0 }
  0x32   : > { %1026 = vmatpush.bf16.msra.mxu1 %v1363_v42 }
  0x33   : > { %1448 = vmatpush.bf16.msra.mxu2 %v1363_v42  ;;  %1449 = vmatpush.bf16.msrb.mxu3 %v1363_v42 }
  0x34   : > { %1295 = vmatmul.msk.bf16.gmra.mxu0 %vm310_vm1, %v1343_v43  ;;  %506 = vadd.xlane.f32.xlu0 %v505_v49  ;;  %v1354_v43 = vld [vmem:[%s1752_s5 + $0x60] sm:$0xff] }
  0x35   : > { %467 = vadd.xlane.f32.xlu1 %v466_v51  ;;  %1303 = vmatmul.msk.bf16.gmra.mxu3 %vm310_vm1, %v1351_v20  ;;  %v1361_v49 = vld [vmem:[%s2455_s2 + $0x20] sm:$0xff]  ;;  %v1360_v51 = vld [vmem:[%s2455_s2 + $0x18] sm:$0xff] }
  0x36   : > { %470 = vadd.xlane.f32.xlu2 %v469_v52  ;;  %1027 = vmatpush.bf16.msra.mxu1 %v1362_v46 }
  0x37   : > { %1450 = vmatpush.bf16.msra.mxu2 %v1362_v46  ;;  %1451 = vmatpush.bf16.msrb.mxu3 %v1362_v46 }
  0x3a   : > { %1028 = vmatpush.bf16.msra.mxu1 %v1361_v49 }
  0x3b   : > { %1452 = vmatpush.bf16.msra.mxu2 %v1361_v49  ;;  %1453 = vmatpush.bf16.msrb.mxu3 %v1361_v49 }
  0x3c   : > { %509 = vadd.xlane.f32.xlu0 %v508_v59  ;;  %v1357_v59 = vld [vmem:[%s2455_s2] sm:$0xff] }
  0x3d   : > { %512 = vadd.xlane.f32.xlu1 %v511_v62 }
  0x3e   : > { %473 = vadd.xlane.f32.xlu2 %v472_v61  ;;  %1029 = vmatpush.bf16.msra.mxu1 %v1360_v51 }
  0x3f   : > { %1454 = vmatpush.bf16.msra.mxu2 %v1360_v51  ;;  %1455 = vmatpush.bf16.msrb.mxu3 %v1360_v51 }
  0x42   : > { %1030 = vmatpush.bf16.msra.mxu1 %v1359_v53 }
  0x43   : > { %1456 = vmatpush.bf16.msra.mxu2 %v1359_v53  ;;  %1457 = vmatpush.bf16.msrb.mxu3 %v1359_v53 }
  0x44   : > { %1296 = vmatmul.msk.bf16.gmra.mxu0 %vm310_vm1, %v1344_v0  ;;  %476 = vadd.xlane.f32.xlu0 %v475_v5 }
  0x45   : > { %515 = vadd.xlane.f32.xlu1 %v514_v7  ;;  %1304 = vmatmul.msk.bf16.gmra.mxu3 %vm310_vm1, %v1352_v30 }
  0x46   : > { %518 = vadd.xlane.f32.xlu2 %v517_v35  ;;  %1031 = vmatpush.bf16.msra.mxu1 %v1358_v57 }
  0x47   : > { %1458 = vmatpush.bf16.msra.mxu2 %v1358_v57  ;;  %1459 = vmatpush.bf16.msrb.mxu3 %v1358_v57 }
  0x4a   : > { %1032 = vmatpush.bf16.msra.mxu1 %v1357_v59 }
  0x4b   : > { %1460 = vmatpush.bf16.msra.mxu2 %v1357_v59  ;;  %1461 = vmatpush.bf16.msrb.mxu3 %v1357_v59 }
  0x4c   : > { %479 = vadd.xlane.f32.xlu0 %v478_v12 }
  0x4d   : > { %482 = vadd.xlane.f32.xlu1 %v481_v14 }
  0x4e   : > { %521 = vadd.xlane.f32.xlu2 %v520_v41 }
  0x54   : > { %1297 = vmatmul.msk.bf16.gmra.mxu0 %vm310_vm1, %v1345_v16  ;;  %524 = vadd.xlane.f32.xlu0 %v523_v21 }
  0x55   : > { %527 = vadd.xlane.f32.xlu1 %v526_v23  ;;  %1305 = vmatmul.msk.bf16.gmra.mxu3 %vm310_vm1, %v1353_v32 }
  0x56   : > { %530 = vadd.xlane.f32.xlu2 %v529_v48 }
  0x5c   : > { %485 = vadd.xlane.f32.xlu0 %v484_v27 }
  0x5d   : > { %488 = vadd.xlane.f32.xlu1 %v487_v28 }
  0x64   : > { %1298 = vmatmul.msk.bf16.gmra.mxu0 %vm310_vm1, %v1346_v29 }
  0x65   : > { %1306 = vmatmul.msk.bf16.gmra.mxu3 %vm310_vm1, %v1354_v43 }
  0x74   : > { %1299 = vmatmul.msk.bf16.gmra.mxu0 %vm310_vm1, %v1347_v31 }
  0x84   : > { %1300 = vmatmul.msk.bf16.gmra.mxu0 %vm310_vm1, %v1348_v38 }
  0x8f   : > { %v1837_v52 = vpop.xlane.xlu0 %491  ;;  %v1843_v54 = vpop.xlane.xlu1 %455 }
  0x90   : > { %v532_v56 = vmax.f32 %v1843_v54, 1e-12 }
  0x91   : > { %v1845_v55 = vpop.xlane.xlu2 %497 }
  0x92   : > { %1504 = vrsqrt.f32 %v532_v56  ;;  %vm564_vm2 = vweird.f32 %v532_v56 }
  0x94   : > { %1301 = vmatmul.msk.bf16.gmra.mxu0 %vm310_vm1, %v1349_v50 }
  0x97   : > { %v1851_v58 = vpop.xlane.xlu0 %494 }
  0x98   : > { %v1856_v60 = vpop.xlane.xlu1 %458  ;;  %v1505_v62 = vpop.eup %1504 }
  0x99   : > { %v1858_v61 = vpop.xlane.xlu2 %500  ;;  %v533_v63 = vmax.f32 %v1856_v60, 1e-12  ;;  %v559_v0 = vmul.f32 %v1505_v62, %v532_v56  ;;  %vm565_vm3 = vweird.f32 %v1505_v62 }
  0x9a   : > { %vm566_vm4 = vmor %vm564_vm2, %vm565_vm3 }
  0x9b   : > { %1506 = vrsqrt.f32 %v533_v63  ;;  %v560_v1 = vmul.f32 %v1505_v62, %v559_v0  ;;  %vm574_vm5 = vweird.f32 %v533_v63 }
  0x9d   : > { %v561_v3 = vmul.f32 0.5, %v560_v1 }
  0x9f   : > { %v1861_v4 = vpop.xlane.xlu0 %461  ;;  %v562_v5 = vsub.f32 1.5, %v561_v3 }
  0xa0   : > { %v534_v6 = vmax.f32 %v1861_v4, 1e-12  ;;  %v1864_v7 = vpop.xlane.xlu1 %464 }
  0xa1   : > { %v363_v2 = vpop.f32.mrf.mxu0  ;;  %v1866_v8 = vpop.xlane.xlu2 %503  ;;  %v535_v10 = vmax.f32 %v1864_v7, 1e-12  ;;  %v563_v12 = vmul.f32 %v1505_v62, %v562_v5 }
  0xa2   : > { %v1507_v9 = vpop.eup %1506  ;;  %1508 = vrsqrt.f32 %v534_v6  ;;  %vm584_vm8 = vweird.f32 %v534_v6  ;;  %v1902_v0 = vmax.f32 %v1866_v8, 1e-12 }
  0xa3   : > { %v569_v11 = vmul.f32 %v1507_v9, %v533_v63  ;;  %1510 = vrsqrt.f32 %v535_v10  ;;  %v567_v14 = vsel %vm566_vm4, %v1505_v62, %v563_v12  ;;  %vm575_vm6 = vweird.f32 %v1507_v9 }
  0xa4   : > { %v844_v16 = vmul.f32 %v567_v14, %v363_v2  ;;  %vm576_vm7 = vmor %vm574_vm5, %vm575_vm6  ;;  %vm594_vm10 = vweird.f32 %v535_v10  ;;  %v818_v49 = vmul.f32 %v567_v14, %v1843_v54 }
  0xa5   : > { %v570_v13 = vmul.f32 %v1507_v9, %v569_v11 }
  0xa6   : > { %v870_v26 = vmul.f32 1.442695, %v844_v16 }
  0xa7   : > { %v571_v17 = vmul.f32 0.5, %v570_v13  ;;  %v1869_v18 = vpop.xlane.xlu0 %506 }
  0xa8   : > { %v1509_v19 = vpop.eup %1508  ;;  %v1871_v21 = vpop.xlane.xlu1 %467 }
  0xa9   : > { %v365_v15 = vpop.f32.mrf.mxu0  ;;  %v572_v20 = vsub.f32 1.5, %v571_v17  ;;  %v1873_v22 = vpop.xlane.xlu2 %470  ;;  %v579_v24 = vmul.f32 %v1509_v19, %v534_v6  ;;  %v1876_v25 = vmax.f32 %v1871_v21, 1e-12  ;;  %vm585_vm9 = vweird.f32 %v1509_v19 }
  0xaa   : > { %v1511_v23 = vpop.eup %1510  ;;  %v1879_v29 = vmax.f32 %v1873_v22, 1e-12  ;;  %vm586_vm12 = vmor %vm584_vm8, %vm585_vm9  ;;  %vm724_vm9 = vweird.f32 %v1902_v0 }
  0xab   : > { %v589_v27 = vmul.f32 %v1511_v23, %v535_v10  ;;  %v573_v28 = vmul.f32 %v1507_v9, %v572_v20  ;;  %v580_v30 = vmul.f32 %v1509_v19, %v579_v24  ;;  %1512 = vrsqrt.f32 %v1876_v25 }
  0xac   : > { %1514 = vrsqrt.f32 %v1879_v29  ;;  %vm595_vm11 = vweird.f32 %v1511_v23  ;;  %vm614_vm14 = vweird.f32 %v1879_v29  ;;  %vm604_vm0 = vweird.f32 %v1876_v25 }
  0xad   : > { %v590_v31 = vmul.f32 %v1511_v23, %v589_v27  ;;  %v577_v32 = vsel %vm576_vm7, %v1507_v9, %v573_v28  ;;  %v581_v35 = vmul.f32 0.5, %v580_v30  ;;  %1516 = vpow2.f32 %v870_v26  ;;  %vm596_vm13 = vmor %vm594_vm10, %vm595_vm11 }
  0xae   : > { %v845_v34 = vmul.f32 %v577_v32, %v365_v15  ;;  %v819_v50 = vmul.f32 %v577_v32, %v1856_v60  ;;  %v1927_v28 = vmax.f32 %v1869_v18, 1e-12 }
  0xaf   : > { %v591_v36 = vmul.f32 0.5, %v590_v31  ;;  %v582_v38 = vsub.f32 1.5, %v581_v35  ;;  %v1883_v39 = vpop.xlane.xlu0 %509 }
  0xb0   : > { %v872_v37 = vmul.f32 1.442695, %v845_v34  ;;  %v1887_v42 = vpop.xlane.xlu1 %512 }
  0xb1   : > { %v368_v33 = vpop.f32.mrf.mxu0  ;;  %v592_v40 = vsub.f32 1.5, %v591_v36  ;;  %v1885_v41 = vpop.xlane.xlu2 %473  ;;  %v583_v44 = vmul.f32 %v1509_v19, %v582_v38  ;;  %v1941_v36 = vmax.f32 %v1883_v39, 1e-12 }
  0xb2   : > { %v1889_v43 = vpop.eup %1512  ;;  %1518 = vpow2.f32 %v872_v37  ;;  %v1892_v45 = vmax.f32 %v1885_v41, 1e-12 }
  0xb3   : > { %v1515_v46 = vpop.eup %1514  ;;  %v599_v47 = vmul.f32 %v1889_v43, %v1876_v25  ;;  %v593_v48 = vmul.f32 %v1511_v23, %v592_v40  ;;  %v587_v51 = vsel %vm586_vm12, %v1509_v19, %v583_v44  ;;  %vm605_vm1 = vweird.f32 %v1889_v43 }
  0xb4   : > { %v609_v53 = vmul.f32 %v1515_v46, %v1879_v29  ;;  %v1517_v56 = vpop.eup %1516  ;;  %v846_v59 = vmul.f32 %v587_v51, %v368_v33  ;;  %1520 = vrsqrt.f32 %v1892_v45  ;;  %vm615_vm15 = vweird.f32 %v1515_v46  ;;  %vm606_vm3 = vmor %vm604_vm0, %vm605_vm1 }
  0xb5   : > { %v600_v57 = vmul.f32 %v1889_v43, %v599_v47  ;;  %v597_v63 = vsel %vm596_vm13, %v1511_v23, %v593_v48  ;;  %v922_v54 = vmul.f32 %v1517_v56, %v818_v49  ;;  %1522 = vrsqrt.f32 %v1902_v0  ;;  %vm616_vm2 = vmor %vm614_vm14, %vm615_vm15 }
  0xb6   : > { %v610_v1 = vmul.f32 %v1515_v46, %v609_v53  ;;  %v874_v6 = vmul.f32 1.442695, %v846_v59  ;;  %v820_v34 = vmul.f32 %v587_v51, %v1861_v4  ;;  %v821_v35 = vmul.f32 %v597_v63, %v1864_v7  ;;  %v1955_v53 = vpop.f32.mrf.mxu3 }
  0xb7   : > { %v1904_v5 = vpop.xlane.xlu0 %476  ;;  %v601_v10 = vmul.f32 0.5, %v600_v57  ;;  %vm624_vm4 = vweird.f32 %v1892_v45  ;;  %vm734_vm13 = vweird.f32 %v1927_v28  ;;  %vm744_vm1 = vweird.f32 %v1941_v36 }
  0xb8   : > { %v1519_v3 = vpop.eup %1518  ;;  %v611_v60 = vmul.f32 0.5, %v610_v1  ;;  %v1907_v11 = vmax.f32 %v1904_v5, 1e-12  ;;  %v1909_v12 = vpop.xlane.xlu1 %515 }
  0xb9   : > { %v370_v62 = vpop.f32.mrf.mxu0  ;;  %v923_v9 = vmul.f32 %v1519_v3, %v819_v50  ;;  %v602_v19 = vsub.f32 1.5, %v601_v10  ;;  %v1973_v10 = vmax.f32 %v1887_v42, 1e-12 }
  0xba   : > { %v847_v2 = vmul.f32 %v597_v63, %v370_v62  ;;  %v1912_v14 = vpop.eup %1520  ;;  %1524 = vrsqrt.f32 %v1907_v11  ;;  %v612_v16 = vsub.f32 1.5, %v611_v60  ;;  %vm634_vm6 = vweird.f32 %v1907_v11 }
  0xbb   : > { %v948_v15 = vpack.c.bf16 %v923_v9, %v922_v54  ;;  %1526 = vpow2.f32 %v874_v6  ;;  %v619_v20 = vmul.f32 %v1912_v14, %v1892_v45  ;;  %v1920_v24 = vpop.eup %1522  ;;  %v603_v29 = vmul.f32 %v1889_v43, %v602_v19 }
  0xbc   : > { %v876_v13 = vmul.f32 1.442695, %v847_v2  ;;  %v613_v23 = vmul.f32 %v1515_v46, %v612_v16  ;;  %v719_v40 = vmul.f32 %v1920_v24, %v1902_v0  ;;  %vm625_vm5 = vweird.f32 %v1912_v14 }
  0xbd   : > { %1033 = vmatmul.bf16.vlgmr.msra.gmra.mxu1 %v948_v15  ;;  %v620_v31 = vmul.f32 %v1912_v14, %v619_v20  ;;  %v1951_v48 = vsel %vm606_vm3, %v1889_v43, %v603_v29  ;;  %vm1982_vm8 = vmor %vm624_vm4, %vm625_vm5  ;;  %vm725_vm10 = vweird.f32 %v1920_v24  ;;  %v2038_v0 = vmax.f32 %v1909_v12, 1e-12 }
  0xbe   : > { %1528 = vpow2.f32 %v876_v13  ;;  %v617_v37 = vsel %vm616_vm2, %v1515_v46, %v613_v23  ;;  %v720_v56 = vmul.f32 %v1920_v24, %v719_v40  ;;  %v1991_v29 = vpop.f32.mrf.mxu3  ;;  %vm726_vm12 = vmor %vm724_vm9, %vm725_vm10  ;;  %vm754_vm9 = vweird.f32 %v1973_v10 }
  0xbf   : > { %v1922_v26 = vpop.xlane.xlu0 %479  ;;  %1530 = vrsqrt.f32 %v1927_v28  ;;  %v621_v49 = vmul.f32 0.5, %v620_v31  ;;  %v1994_v31 = vmax.f32 %v1837_v52, 1e-12 }
  0xc0   : > { %v1924_v27 = vpop.eup %1524  ;;  %v1930_v30 = vpop.xlane.xlu1 %482  ;;  %v1947_v47 = vmax.f32 %v1922_v26, 1e-12  ;;  %v721_v6 = vmul.f32 0.5, %v720_v56 }
  0xc1   : > { %v373_v17 = vpop.f32.mrf.mxu0  ;;  %v629_v25 = vmul.f32 %v1924_v27, %v1907_v11  ;;  %v1936_v32 = vmax.f32 %v1930_v30, 1e-12  ;;  %v1527_v33 = vpop.eup %1526  ;;  %v622_v63 = vsub.f32 1.5, %v621_v49  ;;  %vm635_vm7 = vweird.f32 %v1924_v27 }
  0xc2   : > { %v924_v46 = vmul.f32 %v1527_v33, %v820_v34  ;;  %v848_v57 = vmul.f32 %v1951_v48, %v373_v17  ;;  %v722_v17 = vsub.f32 1.5, %v721_v6  ;;  %vm636_vm11 = vmor %vm634_vm6, %vm635_vm7  ;;  %vm644_vm4 = vweird.f32 %v1947_v47 }
  0xc3   : > { %v630_v44 = vmul.f32 %v1924_v27, %v629_v25  ;;  %1532 = vrsqrt.f32 %v1936_v32  ;;  %v623_v45 = vmul.f32 %v1912_v14, %v622_v63  ;;  %vm654_vm0 = vweird.f32 %v1936_v32 }
  0xc4   : > { %v1529_v38 = vpop.eup %1528  ;;  %1534 = vrsqrt.f32 %v1941_v36  ;;  %v878_v60 = vmul.f32 1.442695, %v848_v57  ;;  %v723_v40 = vmul.f32 %v1920_v24, %v722_v17 }
  0xc5   : > { %v925_v50 = vmul.f32 %v1529_v38, %v821_v35  ;;  %v631_v51 = vmul.f32 0.5, %v630_v44  ;;  %1536 = vrsqrt.f32 %v1947_v47  ;;  %v1964_v1 = vpop.eup %1530  ;;  %v2017_v11 = vsel %vm1982_vm8, %v1912_v14, %v623_v45 }
  0xc6   : > { %v729_v16 = vmul.f32 %v1964_v1, %v1927_v28  ;;  %v2034_v14 = vmax.f32 %v1851_v58, 1e-12  ;;  %v2045_v57 = vsel %vm726_vm12, %v1920_v24, %v723_v40  ;;  %vm735_vm14 = vweird.f32 %v1964_v1  ;;  %v408_v24 = vpop.f32.mrf.mxu3 }
  0xc7   : > { %v1960_v43 = vpop.xlane.xlu0 %524  ;;  %v949_v2 = vpack.c.bf16 %v925_v50, %v924_v46  ;;  %v632_v3 = vsub.f32 1.5, %v631_v51  ;;  %vm736_vm15 = vmor %vm734_vm13, %vm735_vm14  ;;  %vm764_vm14 = vweird.f32 %v2038_v0 }
  0xc8   : > { %v1962_v59 = vpop.xlane.xlu1 %527  ;;  %v730_v44 = vmul.f32 %v1964_v1, %v729_v16  ;;  %v2061_v16 = vmax.f32 %v1845_v55, 1e-12 }
  0xc9   : > { %v375_v4 = vpop.f32.mrf.mxu0  ;;  %v1966_v54 = vpop.eup %1532  ;;  %v633_v23 = vmul.f32 %v1924_v27, %v632_v3 }
  0xca   : > { %v849_v7 = vmul.f32 %v617_v37, %v375_v4  ;;  %v1970_v9 = vpop.eup %1534  ;;  %v649_v20 = vmul.f32 %v1966_v54, %v1936_v32  ;;  %v731_v3 = vmul.f32 0.5, %v730_v44  ;;  %vm655_vm3 = vweird.f32 %v1966_v54 }
  0xcb   : > { %v1977_v15 = vpop.eup %1536  ;;  %v739_v25 = vmul.f32 %v1970_v9, %v1941_v36  ;;  %v2029_v46 = vsel %vm636_vm11, %v1924_v27, %v633_v23  ;;  %vm745_vm2 = vweird.f32 %v1970_v9  ;;  %vm656_vm7 = vmor %vm654_vm0, %vm655_vm3 }
  0xcc   : > { %v880_v62 = vmul.f32 1.442695, %v849_v7  ;;  %v639_v34 = vmul.f32 %v1977_v15, %v1947_v47  ;;  %v823_v7 = vmul.f32 %v617_v37, %v1873_v22  ;;  %v650_v49 = vmul.f32 %v1966_v54, %v649_v20  ;;  %vm746_vm5 = vmor %vm744_vm1, %vm745_vm2 }
  0xcd   : > { %1038 = vmatmul.bf16.gmra.mxu1 %v949_v2  ;;  %v740_v51 = vmul.f32 %v1970_v9, %v739_v25  ;;  %v822_v22 = vmul.f32 %v1951_v48, %v1871_v21  ;;  %v2051_v2 = vmul.f32 %v2045_v57, %v1955_v53  ;;  %v732_v6 = vsub.f32 1.5, %v731_v3 }
  0xce   : > { %1538 = vpow2.f32 %v880_v62  ;;  %v640_v37 = vmul.f32 %v1977_v15, %v639_v34  ;;  %v651_v48 = vmul.f32 0.5, %v650_v49  ;;  %vm645_vm6 = vweird.f32 %v1977_v15  ;;  %v410_v3 = vpop.f32.mrf.mxu3 }
  0xcf   : > { %1540 = vpow2.f32 %v878_v60  ;;  %v2002_v33 = vpop.xlane.xlu0 %485  ;;  %v733_v20 = vmul.f32 %v1964_v1, %v732_v6  ;;  %v741_v40 = vmul.f32 0.5, %v740_v51  ;;  %vm646_vm8 = vmor %vm644_vm4, %vm645_vm6  ;;  %v824_v47 = vmul.f32 %v2017_v11, %v1885_v41 }
  0xd0   : > { %1542 = vrsqrt.f32 %v1973_v10  ;;  %v2008_v35 = vmax.f32 %v2002_v33, 1e-12  ;;  %v2010_v38 = vpop.xlane.xlu1 %488  ;;  %v641_v45 = vmul.f32 0.5, %v640_v37  ;;  %v652_v34 = vsub.f32 1.5, %v651_v48 }
  0xd1   : > { %v378_v13 = vpop.f32.mrf.mxu0  ;;  %v2020_v4 = vmax.f32 %v2010_v38, 1e-12  ;;  %v2075_v49 = vsel %vm736_vm15, %v1964_v1, %v733_v20  ;;  %v742_v37 = vsub.f32 1.5, %v741_v40 }
  0xd2   : > { %1544 = vrsqrt.f32 %v2008_v35  ;;  %v850_v27 = vmul.f32 %v2017_v11, %v378_v13  ;;  %v861_v51 = vmul.f32 %v2075_v49, %v1991_v29  ;;  %v653_v29 = vmul.f32 %v1966_v54, %v652_v34 }
  0xd3   : > { %1546 = vrsqrt.f32 %v1994_v31  ;;  %v902_v34 = vmul.f32 1.442695, %v2051_v2  ;;  %vm664_vm12 = vweird.f32 %v2008_v35  ;;  %vm674_vm1 = vweird.f32 %v2020_v4 }
  0xd4   : > { %v1539_v50 = vpop.eup %1538  ;;  %1548 = vrsqrt.f32 %v2020_v4  ;;  %v882_v23 = vmul.f32 1.442695, %v850_v27  ;;  %v2124_v20 = vsel %vm656_vm7, %v1966_v54, %v653_v29  ;;  %vm694_vm7 = vweird.f32 %v2034_v14 }
  0xd5   : > { %v1541_v62 = vpop.eup %1540  ;;  %v927_v21 = vmul.f32 %v1539_v50, %v823_v7  ;;  %1550 = vrsqrt.f32 %v2034_v14 }
  0xd6   : > { %v2053_v60 = vpop.eup %1542  ;;  %1552 = vrsqrt.f32 %v2038_v0  ;;  %v926_v53 = vmul.f32 %v1541_v62, %v822_v22  ;;  %v642_v22 = vsub.f32 1.5, %v641_v45  ;;  %v413_v29 = vpop.f32.mrf.mxu3 }
  0xd7   : > { %v749_v28 = vmul.f32 %v2053_v60, %v1973_v10  ;;  %vm755_vm10 = vweird.f32 %v2053_v60 }
  0xd8   : > { %v2058_v13 = vpop.eup %1544  ;;  %v950_v25 = vpack.c.bf16 %v927_v21, %v926_v53  ;;  %v2096_v21 = vmax.f32 %v1858_v61, 1e-12  ;;  %v643_v6 = vmul.f32 %v1977_v15, %v642_v22  ;;  %vm756_vm11 = vmor %vm754_vm9, %vm755_vm10 }
  0xd9   : > { %v380_v56 = vpop.f32.mrf.mxu0  ;;  %v2064_v17 = vpop.eup %1546  ;;  %v659_v7 = vmul.f32 %v2058_v13, %v2008_v35  ;;  %v750_v1 = vmul.f32 %v2053_v60, %v749_v28  ;;  %vm665_vm13 = vweird.f32 %v2058_v13 }
  0xda   : > { %v851_v63 = vmul.f32 %v2029_v46, %v380_v56  ;;  %v2070_v44 = vpop.eup %1548  ;;  %v679_v56 = vmul.f32 %v2064_v17, %v1994_v31  ;;  %vm2169_vm0 = vmor %vm664_vm12, %vm665_vm13  ;;  %vm685_vm6 = vweird.f32 %v2064_v17 }
  0xdb   : > { %v2082_v27 = vpop.eup %1550  ;;  %v669_v62 = vmul.f32 %v2070_v44, %v2020_v4  ;;  %v660_v48 = vmul.f32 %v2058_v13, %v659_v7  ;;  %vm675_vm2 = vweird.f32 %v2070_v44 }
  0xdc   : > { %v884_v19 = vmul.f32 1.442695, %v851_v63  ;;  %v2088_v36 = vpop.eup %1552  ;;  %v743_v63 = vmul.f32 %v1970_v9, %v742_v37  ;;  %v2109_v45 = vmul.f32 %v2064_v17, %v679_v56  ;;  %v689_v22 = vmul.f32 %v2082_v27, %v2034_v14  ;;  %vm676_vm4 = vmor %vm674_vm1, %vm675_vm2 }
  0xdd   : > { %1043 = vmatmul.bf16.gmra.mxu1 %v950_v25  ;;  %v759_v28 = vmul.f32 %v2088_v36, %v2038_v0  ;;  %vm765_vm15 = vweird.f32 %v2088_v36  ;;  %vm704_vm1 = vweird.f32 %v2061_v16 }
  0xde   : > { %1554 = vpow2.f32 %v884_v19  ;;  %v2106_v53 = vsel %vm746_vm5, %v1970_v9, %v743_v63  ;;  %v825_v19 = vmul.f32 %v2029_v46, %v1904_v5  ;;  %v670_v9 = vmul.f32 %v2070_v44, %v669_v62  ;;  %vm2181_vm3 = vmor %vm764_vm14, %vm765_vm15 }
  0xdf   : > { %1556 = vpow2.f32 %v882_v23  ;;  %v2120_v32 = vmul.f32 %v2106_v53, %v408_v24  ;;  %v751_v23 = vmul.f32 0.5, %v750_v1  ;;  %v2129_v5 = vmax.f32 %v1960_v43, 1e-12 }
  0xe0   : > { %1558 = vrsqrt.f32 %v2061_v16  ;;  %v661_v46 = vmul.f32 0.5, %v660_v48  ;;  %v2135_v24 = vsel %vm646_vm8, %v1977_v15, %v643_v6  ;;  %v760_v37 = vmul.f32 %v2088_v36, %v759_v28 }
  0xe1   : > { %v383_v50 = vpop.f32.mrf.mxu0  ;;  %1560 = vrsqrt.f32 %v2096_v21  ;;  %v752_v40 = vsub.f32 1.5, %v751_v23  ;;  %v904_v1 = vmul.f32 1.442695, %v861_v51  ;;  %v2147_v15 = vmax.f32 %v1962_v59, 1e-12 }
  0xe2   : > { %v671_v11 = vmul.f32 0.5, %v670_v9  ;;  %1562 = vrsqrt.f32 %v2129_v5  ;;  %v662_v63 = vsub.f32 1.5, %v661_v46  ;;  %v852_v51 = vmul.f32 %v2135_v24, %v383_v50  ;;  %v2162_v50 = vpop.xlane.xlu2 %518 }
  0xe3   : > { %v753_v62 = vmul.f32 %v2053_v60, %v752_v40  ;;  %1564 = vpow2.f32 %v902_v34  ;;  %v761_v9 = vmul.f32 0.5, %v760_v37  ;;  %v681_v37 = vmul.f32 0.5, %v2109_v45 }
  0xe4   : > { %v1555_v25 = vpop.eup %1554  ;;  %1566 = vpow2.f32 %v904_v1  ;;  %v672_v23 = vsub.f32 1.5, %v671_v11  ;;  %v663_v46 = vmul.f32 %v2058_v13, %v662_v63  ;;  %v2196_v63 = vpop.f32.mrf.mxu3  ;;  %vm684_vm5 = vweird.f32 %v1994_v31 }
  0xe5   : > { %v1557_v7 = vpop.eup %1556  ;;  %v929_v2 = vmul.f32 %v1555_v25, %v825_v19  ;;  %v2155_v48 = vsel %vm756_vm11, %v2053_v60, %v753_v62  ;;  %1568 = vrsqrt.f32 %v2147_v15  ;;  %v835_v62 = vmul.f32 %v2075_v49, %v1869_v18  ;;  %vm2265_vm8 = vmor %vm684_vm5, %vm685_vm6 }
  0xe6   : > { %v2144_v41 = vpop.eup %1558  ;;  %v928_v10 = vmul.f32 %v1557_v7, %v824_v47  ;;  %v863_v19 = vmul.f32 %v2155_v48, %v410_v3  ;;  %v886_v3 = vmul.f32 1.442695, %v852_v51  ;;  %v762_v47 = vsub.f32 1.5, %v761_v9 }
  0xe7   : > { %v2157_v6 = vpop.eup %1560  ;;  %v699_v0 = vmul.f32 %v2144_v41, %v2061_v16  ;;  %v690_v7 = vmul.f32 %v2082_v27, %v689_v22  ;;  %v673_v11 = vmul.f32 %v2070_v44, %v672_v23  ;;  %v2203_v45 = vsel %vm2169_vm0, %v2058_v13, %v663_v46 }
  0xe8   : > { %v951_v25 = vpack.c.bf16 %v929_v2, %v928_v10  ;;  %v2185_v40 = vpop.eup %1562  ;;  %v834_v2 = vmul.f32 %v2045_v57, %v1866_v8  ;;  %v709_v22 = vmul.f32 %v2157_v6, %v2096_v21  ;;  %v827_v49 = vmul.f32 %v2124_v20, %v1930_v30 }
  0xe9   : > { %v385_v54 = vpop.f32.mrf.mxu0  ;;  %v1565_v1 = vpop.eup %1564  ;;  %v2218_v57 = vmul.f32 %v2144_v41, %v699_v0  ;;  %v789_v13 = vmul.f32 %v2185_v40, %v2129_v5  ;;  %v682_v10 = vsub.f32 1.5, %v681_v37  ;;  %v906_v30 = vmul.f32 1.442695, %v2120_v32 }
  0xea   : > { %v853_v56 = vmul.f32 %v2124_v20, %v385_v54  ;;  %v2174_v54 = vmax.f32 %v2162_v50, 1e-12  ;;  %v1567_v51 = vpop.eup %1566  ;;  %v2230_v9 = vpop.xlane.xlu2 %521  ;;  %v2237_v46 = vmul.f32 %v2157_v6, %v709_v22  ;;  %v691_v20 = vmul.f32 0.5, %v690_v7 }
  0xeb   : > { %v2224_v4 = vpop.eup %1568  ;;  %v2234_v23 = vmul.f32 %v1567_v51, %v835_v62  ;;  %v2241_v60 = vmax.f32 %v2230_v9, 1e-12  ;;  %v908_v0 = vmul.f32 1.442695, %v863_v19  ;;  %v790_v37 = vmul.f32 %v2185_v40, %v789_v13 }
  0xec   : > { %v888_v28 = vmul.f32 1.442695, %v853_v56  ;;  %v763_v56 = vmul.f32 %v2088_v36, %v762_v47  ;;  %v692_v19 = vsub.f32 1.5, %v691_v20  ;;  %vm774_vm9 = vweird.f32 %v2174_v54 }
  0xed   : > { %1048 = vmatmul.bf16.gmra.mxu1 %v951_v25  ;;  %vm695_vm11 = vweird.f32 %v2082_v27  ;;  %vm794_vm12 = vweird.f32 %v2129_v5  ;;  %vm795_vm13 = vweird.f32 %v2185_v40  ;;  %vm784_vm2 = vweird.f32 %v2241_v60 }
  0xee   : > { %1570 = vpow2.f32 %v888_v28  ;;  %v2212_v8 = vsel %vm2181_vm3, %v2088_v36, %v763_v56  ;;  %v2227_v28 = vsel %vm676_vm4, %v2070_v44, %v673_v11  ;;  %vm2299_vm15 = vmor %vm694_vm7, %vm695_vm11  ;;  %vm705_vm4 = vweird.f32 %v2144_v41 }
  0xef   : > { %1572 = vrsqrt.f32 %v2174_v54  ;;  %v2215_v18 = vmul.f32 %v2212_v8, %v413_v29  ;;  %v2232_v29 = vmul.f32 %v1565_v1, %v834_v2  ;;  %v799_v2 = vmul.f32 %v2224_v4, %v2147_v15  ;;  %vm796_vm0 = vmor %vm794_vm12, %vm795_vm13 }
  0xf0   : > { %1574 = vpow2.f32 %v886_v3  ;;  %v826_v3 = vmul.f32 %v2135_v24, %v1922_v26  ;;  %v683_v26 = vmul.f32 %v2064_v17, %v682_v10  ;;  %v2257_v24 = vpop.f32.mrf.mxu3  ;;  %vm804_vm6 = vweird.f32 %v2147_v15  ;;  %vm706_vm11 = vmor %vm704_vm1, %vm705_vm4 }
  0xf1   : > { %v388_v35 = vpop.f32.mrf.mxu0  ;;  %1576 = vrsqrt.f32 %v2241_v60  ;;  %vm805_vm7 = vweird.f32 %v2224_v4  ;;  %vm714_vm13 = vweird.f32 %v2096_v21 }
  0xf2   : > { %v854_v36 = vmul.f32 %v2203_v45, %v388_v35  ;;  %v956_v35 = vpack.c.bf16 %v2234_v23, %v2232_v29  ;;  %1578 = vpow2.f32 %v906_v30 }
  0xf3   : > { %1580 = vpow2.f32 %v908_v0  ;;  %v2283_v0 = vsel %vm2265_vm8, %v2064_v17, %v683_v26  ;;  %v836_v26 = vmul.f32 %v2106_v53, %v1883_v39 }
  0xf4   : > { %v1571_v25 = vpop.eup %1570  ;;  %v890_v56 = vmul.f32 1.442695, %v854_v36  ;;  %v2272_v36 = vpop.xlane.xlu2 %530 }
  0xf5   : > { %v2243_v44 = vpop.eup %1572  ;;  %v931_v1 = vmul.f32 %v1571_v25, %v827_v49  ;;  %v791_v49 = vmul.f32 0.5, %v790_v37  ;;  %v2276_v30 = vmax.f32 %v2272_v36, 1e-12 }
  0xf6   : > { %v1575_v34 = vpop.eup %1574  ;;  %v769_v7 = vmul.f32 %v2243_v44, %v2174_v54  ;;  %vm775_vm10 = vweird.f32 %v2243_v44  ;;  %1582 = vpow2.f32 %v890_v56  ;;  %v701_v56 = vmul.f32 0.5, %v2218_v57 }
  0xf7   : > { %v930_v51 = vmul.f32 %v1575_v34, %v826_v3  ;;  %v1577_v25 = vpop.eup %1576  ;;  %v792_v20 = vsub.f32 1.5, %v791_v49  ;;  %v800_v3 = vmul.f32 %v2224_v4, %v799_v2  ;;  %vm2289_vm14 = vmor %vm774_vm9, %vm775_vm10  ;;  %v828_v57 = vmul.f32 %v2203_v45, %v2002_v33 }
  0xf8   : > { %v770_v11 = vmul.f32 %v2243_v44, %v769_v7  ;;  %v779_v37 = vmul.f32 %v1577_v25, %v2241_v60  ;;  %v693_v7 = vmul.f32 %v2082_v27, %v692_v19  ;;  %v910_v19 = vmul.f32 1.442695, %v2215_v18  ;;  %v420_v2 = vpop.f32.mrf.mxu3  ;;  %vm806_vm10 = vmor %vm804_vm6, %vm805_vm7 }
  0xf9   : > { %v390_v47 = vpop.f32.mrf.mxu0  ;;  %v952_v10 = vpack.c.bf16 %v931_v1, %v930_v51  ;;  %v793_v14 = vmul.f32 %v2185_v40, %v792_v20  ;;  %v837_v51 = vmul.f32 %v2155_v48, %v1887_v42  ;;  %vm785_vm3 = vweird.f32 %v1577_v25 }
  0xfa   : > { %v855_v32 = vmul.f32 %v2227_v28, %v390_v47  ;;  %v771_v13 = vmul.f32 0.5, %v770_v11  ;;  %v780_v11 = vmul.f32 %v1577_v25, %v779_v37  ;;  %v829_v33 = vmul.f32 %v2227_v28, %v2010_v38  ;;  %vm786_vm5 = vmor %vm784_vm2, %vm785_vm3 }
  0xfb   : > { %v697_v42 = vsel %vm2299_vm15, %v2082_v27, %v693_v7  ;;  %v702_v48 = vsub.f32 1.5, %v701_v56  ;;  %v2334_v45 = vsel %vm796_vm0, %v2185_v40, %v793_v14  ;;  %vm814_vm8 = vweird.f32 %v2276_v30 }
  0xfc   : > { %v892_v62 = vmul.f32 1.442695, %v855_v32  ;;  %v772_v31 = vsub.f32 1.5, %v771_v13  ;;  %v1579_v32 = vpop.eup %1578  ;;  %v781_v18 = vmul.f32 0.5, %v780_v11  ;;  %v867_v38 = vmul.f32 %v2334_v45, %v420_v2 }
  0xfd   : > { %1053 = vmatmul.bf16.gmra.mxu1 %v952_v10  ;;  %v1581_v1 = vpop.eup %1580  ;;  %v2341_v28 = vmul.f32 %v1579_v32, %v836_v26  ;;  %v703_v26 = vmul.f32 %v2144_v41, %v702_v48  ;;  %v830_v2 = vmul.f32 %v2283_v0, %v1837_v52  ;;  %v831_v14 = vmul.f32 %v697_v42, %v1851_v58 }
  0xfe   : > { %1584 = vpow2.f32 %v892_v62  ;;  %v773_v54 = vmul.f32 %v2243_v44, %v772_v31  ;;  %v1583_v53 = vpop.eup %1582  ;;  %v782_v60 = vsub.f32 1.5, %v781_v18  ;;  %v2343_v27 = vmul.f32 %v1581_v1, %v837_v51 }
  0xff   : > { %1586 = vrsqrt.f32 %v2276_v30  ;;  %v932_v40 = vmul.f32 %v1583_v53, %v828_v57  ;;  %v916_v51 = vmul.f32 1.442695, %v867_v38  ;;  %v707_v18 = vsel %vm706_vm11, %v2144_v41, %v703_v26 }
 0x100   : > { %v2323_v39 = vsel %vm2289_vm14, %v2243_v44, %v773_v54  ;;  %1588 = vpow2.f32 %v910_v19  ;;  %v783_v31 = vmul.f32 %v1577_v25, %v782_v60  ;;  %v423_v17 = vpop.f32.mrf.mxu3  ;;  %v957_v32 = vpack.c.bf16 %v2343_v27, %v2341_v28 }
 0x101   : > { %v393_v47 = vpop.f32.mrf.mxu0  ;;  %v865_v5 = vmul.f32 %v2323_v39, %v2196_v63  ;;  %v2338_v63 = vmul.f32 0.5, %v2237_v46  ;;  %v801_v46 = vmul.f32 0.5, %v800_v3  ;;  %vm715_vm14 = vweird.f32 %v2157_v6 }
 0x102   : > { %v856_v62 = vmul.f32 %v2283_v0, %v393_v47  ;;  %v2347_v37 = vsel %vm786_vm5, %v1577_v25, %v783_v31  ;;  %v838_v0 = vmul.f32 %v2212_v8, %v1909_v12  ;;  %vm716_vm15 = vmor %vm714_vm13, %vm715_vm14  ;;  %v832_v26 = vmul.f32 %v707_v18, %v1845_v55 }
 0x103   : > { %v912_v10 = vmul.f32 1.442695, %v865_v5  ;;  %v866_v54 = vmul.f32 %v2347_v37, %v2257_v24  ;;  %v802_v25 = vsub.f32 1.5, %v801_v46 }
 0x104   : > { %v1585_v44 = vpop.eup %1584  ;;  %v894_v13 = vmul.f32 1.442695, %v856_v62  ;;  %v712_v62 = vsub.f32 1.5, %v2338_v63 }
 0x105   : > { %v1587_v22 = vpop.eup %1586  ;;  %v933_v34 = vmul.f32 %v1585_v44, %v829_v33  ;;  %v803_v11 = vmul.f32 %v2224_v4, %v802_v25  ;;  %v914_v52 = vmul.f32 1.442695, %v866_v54  ;;  %v839_v33 = vmul.f32 %v2323_v39, %v2162_v50 }
 0x106   : > { %v809_v20 = vmul.f32 %v1587_v22, %v2276_v30  ;;  %1590 = vpow2.f32 %v894_v13  ;;  %v1589_v1 = vpop.eup %1588  ;;  %vm815_vm9 = vweird.f32 %v1587_v22  ;;  %v713_v60 = vmul.f32 %v2157_v6, %v712_v62 }
 0x107   : > { %1592 = vpow2.f32 %v912_v10  ;;  %v953_v19 = vpack.c.bf16 %v933_v34, %v932_v40  ;;  %vm2368_vm12 = vmor %vm814_vm8, %vm815_vm9  ;;  %v807_v53 = vsel %vm806_vm10, %v2224_v4, %v803_v11  ;;  %v942_v8 = vmul.f32 %v1589_v1, %v838_v0 }
 0x108   : > { %v810_v7 = vmul.f32 %v1587_v22, %v809_v20  ;;  %v868_v58 = vmul.f32 %v807_v53, %v423_v17  ;;  %v425_v4 = vpop.f32.mrf.mxu3  ;;  %v717_v40 = vsel %vm716_vm15, %v2157_v6, %v713_v60  ;;  %v842_v20 = vmul.f32 %v807_v53, %v1962_v59 }
 0x109   : > { %v395_v49 = vpop.f32.mrf.mxu0  ;;  %v840_v17 = vmul.f32 %v2347_v37, %v2230_v9 }
 0x10a   : > { %v857_v47 = vmul.f32 %v697_v42, %v395_v49  ;;  %v811_v3 = vmul.f32 0.5, %v810_v7  ;;  %v918_v41 = vmul.f32 1.442695, %v868_v58 }
 0x10c   : > { %v896_v56 = vmul.f32 1.442695, %v857_v47  ;;  %v812_v24 = vsub.f32 1.5, %v811_v3  ;;  %v1591_v5 = vpop.eup %1590 }
 0x10d   : > { %1058 = vmatmul.bf16.gmra.mxu1 %v953_v19  ;;  %v1593_v30 = vpop.eup %1592  ;;  %v934_v13 = vmul.f32 %v1591_v5, %v830_v2  ;;  %v833_v19 = vmul.f32 %v717_v40, %v1858_v61 }
 0x10e   : > { %1594 = vpow2.f32 %v896_v56  ;;  %v813_v16 = vmul.f32 %v1587_v22, %v812_v24  ;;  %v943_v39 = vmul.f32 %v1593_v30, %v839_v33  ;;  %v841_v56 = vmul.f32 %v2334_v45, %v1960_v43 }
 0x10f   : > { %1596 = vpow2.f32 %v916_v51 }
 0x110   : > { %v817_v42 = vsel %vm2368_vm12, %v1587_v22, %v813_v16  ;;  %1598 = vpow2.f32 %v914_v52  ;;  %v958_v10 = vpack.c.bf16 %v943_v39, %v942_v8 }
 0x111   : > { %v398_v15 = vpop.f32.mrf.mxu0  ;;  %v869_v63 = vmul.f32 %v817_v42, %v425_v4  ;;  %1600 = vpow2.f32 %v918_v41  ;;  %v843_v21 = vmul.f32 %v817_v42, %v2272_v36 }
 0x112   : > { %v858_v44 = vmul.f32 %v707_v18, %v398_v15 }
 0x113   : > { %v920_v12 = vmul.f32 1.442695, %v869_v63 }
 0x114   : > { %v1595_v48 = vpop.eup %1594  ;;  %v898_v22 = vmul.f32 1.442695, %v858_v44 }
 0x115   : > { %v935_v38 = vmul.f32 %v1595_v48, %v831_v14  ;;  %1602 = vpow2.f32 %v920_v12  ;;  %v1597_v47 = vpop.eup %1596 }
 0x116   : > { %v1599_v34 = vpop.eup %1598  ;;  %1604 = vpow2.f32 %v898_v22  ;;  %v945_v25 = vmul.f32 %v1597_v47, %v841_v56 }
 0x117   : > { %v954_v50 = vpack.c.bf16 %v935_v38, %v934_v13  ;;  %v1601_v7 = vpop.eup %1600  ;;  %v944_v59 = vmul.f32 %v1599_v34, %v840_v17 }
 0x118   : > { %v946_v6 = vmul.f32 %v1601_v7, %v842_v20 }
 0x119   : > { %v400_v49 = vpop.f32.mrf.mxu0  ;;  %1063 = vmatmul.bf16.vlgmr.msra.gmra.mxu2 %v954_v50  ;;  %v959_v24 = vpack.c.bf16 %v945_v25, %v944_v59 }
 0x11a   : > { %v859_v31 = vmul.f32 %v717_v40, %v400_v49 }
 0x11b   : > { %v1603_v54 = vpop.eup %1602 }
 0x11c   : > { %v900_v46 = vmul.f32 1.442695, %v859_v31  ;;  %v947_v1 = vmul.f32 %v1603_v54, %v843_v21  ;;  %v1605_v36 = vpop.eup %1604 }
 0x11d   : > { %v936_v37 = vmul.f32 %v1605_v36, %v832_v26 }
 0x11e   : > { %1606 = vpow2.f32 %v900_v46  ;;  %v960_v3 = vpack.c.bf16 %v947_v1, %v946_v6 }
 0x120   : > { %1093 = vmatmul.bf16.vlgmr.msrb.gmra.mxu3 %v960_v3 }
 0x124   : > { %v1607_v9 = vpop.eup %1606 }
 0x125   : > { %v937_v11 = vmul.f32 %v1607_v9, %v833_v19 }
 0x127   : > { %v955_v43 = vpack.c.bf16 %v937_v11, %v936_v37 }
 0x129   : > { %1068 = vmatmul.bf16.gmra.mxu2 %v955_v43 }
 0x139   : > { %1073 = vmatmul.bf16.gmra.mxu2 %v956_v35 }
 0x13a   : > { %v1034_v45 = vpop.f32.mrf.mxu1 }
 0x142   : > { %v1036_v2 = vpop.f32.mrf.mxu1 }
 0x143   : > { %v1369_v14 = vpack.c.bf16 %v1036_v2, %v1034_v45 }
 0x145   : > { %1370 = vst [vmem:[%s2401_s8] sm:$0xff] %v1369_v14  }
 0x149   : > { %1078 = vmatmul.bf16.gmra.mxu2 %v957_v32 }
 0x14a   : > { %v1039_v55 = vpop.f32.mrf.mxu1 }
 0x152   : > { %v1041_v61 = vpop.f32.mrf.mxu1 }
 0x153   : > { %v1374_v29 = vpack.c.bf16 %v1041_v61, %v1039_v55 }
 0x155   : > { %1431 = vst [vmem:[%s2401_s8 + $0x8] sm:$0xff] %v1374_v29  }
 0x159   : > { %1083 = vmatmul.bf16.gmra.mxu2 %v958_v10 }
 0x15a   : > { %v1044_v23 = vpop.f32.mrf.mxu1 }
 0x162   : > { %v1046_v35 = vpop.f32.mrf.mxu1 }
 0x163   : > { %v1379_v57 = vpack.c.bf16 %v1046_v35, %v1044_v23 }
 0x165   : > { %1432 = vst [vmem:[%s2401_s8 + $0x10] sm:$0xff] %v1379_v57  }
 0x169   : > { %1088 = vmatmul.bf16.gmra.mxu2 %v959_v24 }
 0x16a   : > { %v1049_v15 = vpop.f32.mrf.mxu1 }
 0x172   : > { %v1051_v62 = vpop.f32.mrf.mxu1 }
 0x173   : > { %v1384_v16 = vpack.c.bf16 %v1051_v62, %v1049_v15 }
 0x175   : > { %1433 = vst [vmem:[%s2401_s8 + $0x18] sm:$0xff] %v1384_v16  }
 0x17a   : > { %v1054_v51 = vpop.f32.mrf.mxu1 }
 0x182   : > { %v1056_v28 = vpop.f32.mrf.mxu1 }
 0x183   : > { %v1389_v27 = vpack.c.bf16 %v1056_v28, %v1054_v51 }
 0x185   : > { %1434 = vst [vmem:[%s2401_s8 + $0x20] sm:$0xff] %v1389_v27  }
 0x18a   : > { %v1059_v32 = vpop.f32.mrf.mxu1 }
 0x192   : > { %v1061_v53 = vpop.f32.mrf.mxu1 }
 0x193   : > { %v1394_v5 = vpack.c.bf16 %v1061_v53, %v1059_v32 }
 0x195   : > { %1435 = vst [vmem:[%s2401_s8 + $0x28] sm:$0xff] %v1394_v5  }
 0x19c   : > { %v1064_v18 = vpop.f32.mrf.mxu2 }
 0x1a3   : > { %v1094_v30 = vpop.f32.mrf.mxu3 }
 0x1a4   : > { %v1066_v52 = vpop.f32.mrf.mxu2 }
 0x1a5   : > { %v1399_v58 = vpack.c.bf16 %v1066_v52, %v1064_v18 }
 0x1a7   : > { %1436 = vst [vmem:[%s2401_s8 + $0x30] sm:$0xff] %v1399_v58  }
 0x1ab   : > { %v1096_v33 = vpop.f32.mrf.mxu3 }
 0x1ac   : > { %v1069_v0 = vpop.f32.mrf.mxu2  ;;  %v1429_v42 = vpack.c.bf16 %v1096_v33, %v1094_v30 }
 0x1ae   : > { %1442 = vst [vmem:[%s2401_s8 + $0x60] sm:$0xff] %v1429_v42  }
 0x1b4   : > { %v1071_v4 = vpop.f32.mrf.mxu2 }
 0x1b5   : > { %v1404_v48 = vpack.c.bf16 %v1071_v4, %v1069_v0 }
 0x1b7   : > { %1437 = vst [vmem:[%s2401_s8 + $0x38] sm:$0xff] %v1404_v48  }
 0x1bc   : > { %v1074_v44 = vpop.f32.mrf.mxu2 }
 0x1c4   : > { %v1076_v41 = vpop.f32.mrf.mxu2 }
 0x1c5   : > { %v1409_v63 = vpack.c.bf16 %v1076_v41, %v1074_v44 }
 0x1c7   : > { %1438 = vst [vmem:[%s2401_s8 + $0x40] sm:$0xff] %v1409_v63  }
 0x1cc   : > { %v1079_v60 = vpop.f32.mrf.mxu2 }
 0x1d4   : > { %v1081_v13 = vpop.f32.mrf.mxu2 }
 0x1d5   : > { %v1414_v38 = vpack.c.bf16 %v1081_v13, %v1079_v60 }
 0x1d7   : > { %1439 = vst [vmem:[%s2401_s8 + $0x48] sm:$0xff] %v1414_v38  }
 0x1dc   : > { %v1084_v12 = vpop.f32.mrf.mxu2 }
 0x1e4   : > { %v1086_v50 = vpop.f32.mrf.mxu2 }
 0x1e5   : > { %v1419_v8 = vpack.c.bf16 %v1086_v50, %v1084_v12 }
 0x1e7   : > { %1440 = vst [vmem:[%s2401_s8 + $0x50] sm:$0xff] %v1419_v8  }
 0x1ec   : > { %v1089_v39 = vpop.f32.mrf.mxu2 }
 0x1f4   : > { %v1091_v22 = vpop.f32.mrf.mxu2 }
 0x1f5   : > { %v1424_v49 = vpack.c.bf16 %v1091_v22, %v1089_v39 }
 0x1f7   : > { %1441 = vst [vmem:[%s2401_s8 + $0x58] sm:$0xff] %v1424_v49  }
 0x1f8   : > { %1635 = shalt.err (!%p1632_p3)
}
 0x1f9   : > { %s1672_s4 = smov 64   ;;  %s1673_s5 = smov 4  }
 0x1fa   : > { %1463 = dma.vmem_to_hbm [thread:$0]  (%p1732_p5), %s1165_s19, 1664, %s1167_s20, %s1152_s24, %s1672_s4, %s1672_s4, %s1673_s5  }
 0x1fb PF: > { %p1469_p4 = scmp.ge.s32.totalorder %s1670_s15, 2  ;;  %s1181_s6 = sand.u32 1, %s1658_s12  }
 0x1fc   : > { %s1182_s7 = scalar_lea.sflag [#allocation3], %s1181_s6 }
 0x1fd   : > { %p1466_p7 = pnand %p1469_p4, %p1736_p6 }
 0x1ff   : > { %p1467_p8 = pneg %p1466_p7 }
 0x201   : > { %1653 = dma.done.wait (%p1467_p8), %s1182_s7, 1664  }
 0x202   : > { %1655 = vsyncadd (%p1467_p8), %s1182_s7, 4294965632  ;;  %p13_p9 = scmp.ge.s32.totalorder %s1719_s18, 4   ;;  %s2473_s12 = smov %s1662_s13 }
 0x203   : > { %s2474_s13 = smov %s1666_s14  ;;  %s2475_s14 = smov %s1730_s21 }
 0x204   : > { %s2476_s15 = smov %s1719_s18  ;;  %15 = sbr.rel (!%p13_p9) target bundleno = 3 (0x3), region = 67 }
 0x209   :  { %1188 = vsyncpa [#allocation3], 1 }
 0x20a   :  { %1190 = vsyncpa [#allocation3 + $0x1], 1 }

</bundles_post_ra>
